<compile_context>
chip_gen: v6e
topology: v6e:2x2x1
jax: 0.10.0
libtpu: 0.0.40
codegen_flags: <defaults>
</compile_context>

<pallas_src>
import numpy as np
import jax
import jax.numpy as jnp
from jax.experimental import pallas as pl
from jax.experimental.pallas import tpu as pltpu


def _round_up(n, m):
    return ((n + m - 1) // m) * m


def _cdiv(a, b):
    return (a + b - 1) // b


def _lane(n):
    return _round_up(n, 128)


def _vmem_budget_and_limit():
    """Generation-aware VMEM sizing: big tiles on 128-MiB chips (v5e/v6e),
    conservative on 64-MiB chips (v7x) or when the query is unavailable."""
    cap = None
    try:
        cap = getattr(pltpu.get_tpu_info(), "vmem_capacity_bytes", None)
    except Exception:
        cap = None
    if cap is not None and cap >= 96 * (1 << 20):
        return 48 * (1 << 20), 64 * (1 << 20)
    return 16 * (1 << 20), 32 * (1 << 20)


def _num_tensorcores():
    """Rough TensorCore-per-chip heuristic (megacore / v7x get 2)."""
    try:
        kind = jax.devices()[0].device_kind.lower()
    except Exception:
        return 1
    return 2 if any(tag in kind for tag in ("v7", "v4", "v5p")) else 1


def _choose_seq_tile(S, row_bytes, *, budget, min_steps, max_tile=2048):
    """Largest multiple-of-8 row tile whose double-buffered blocks fit `budget`,
    shrunk (down to 8) until the grid has >= min_steps steps when S allows it."""
    def halve(t):
        return max(8, (t // 2) // 8 * 8)

    tile = min(_round_up(max_tile, 8), _round_up(S, 8))
    while tile > 8 and 2 * tile * row_bytes > budget:   # x2: double-buffered
        tile = halve(tile)
    while tile > 8 and _cdiv(S, tile) < min_steps:
        tile = halve(tile)
    return tile


def _softmax_rows(sims_f32):
    """Numerically-stable softmax over the batch axis (PyTorch dim=1)."""
    m = jnp.max(sims_f32, axis=1, keepdims=True)        # XLU lane-reduce
    e = jnp.exp(sims_f32 - m)                            # EUP
    denom = jnp.sum(e, axis=1, keepdims=True)
    return e / denom                                     # exact: HBM-bound kernel


def _attn_dense_kernel(sims_ref, hots_ref, out_ref):
    # sims_ref: (TS, B)   hots_ref: (TS, B*C)   out_ref: (TS, C)
    sims = sims_ref[...].astype(jnp.float32)
    b_dim = sims.shape[1]
    c_dim = out_ref.shape[1]

    p = _softmax_rows(sims)                               # (TS, B)

    # preds[s, c] = sum_b p[s, b] * hots[s, b, c]
    # Unrolled over the (small, static) batch axis; per-b lane slice of the 2D
    # hots block.  No (TS, B, C) broadcast intermediate; VPU-only (MXU can't be
    # fed by these tiny [1,B]x[B,C] products).
    acc = jnp.zeros((sims.shape[0], c_dim), jnp.float32)
    # TODO(synk): switch to lax.fori_loop if B grows beyond ~16 (code size / vreg pressure).
    for b in range(b_dim):
        hot_b = hots_ref[:, b * c_dim:(b + 1) * c_dim].astype(jnp.float32)
        acc = acc + p[:, b:b + 1] * hot_b

    out_ref[...] = acc.astype(out_ref.dtype)              # single store per tile


def _attn_labels_kernel(sims_ref, labels_ref, out_ref):
    # sims_ref: (TS, B)   labels_ref: (TS, B) int32   out_ref: (TS, C)
    sims = sims_ref[...].astype(jnp.float32)
    ts, b_dim = sims.shape
    c_dim = out_ref.shape[1]

    p = _softmax_rows(sims)
    labels = labels_ref[...]
    iota_c = jax.lax.broadcasted_iota(jnp.int32, (ts, c_dim), 1)

    acc = jnp.zeros((ts, c_dim), jnp.float32)
    for b in range(b_dim):
        # In-kernel one-hot: compare + select stays on the VPU, hidden under DMA.
        acc = acc + jnp.where(labels[:, b:b + 1] == iota_c, p[:, b:b + 1], 0.0)

    out_ref[...] = acc.astype(out_ref.dtype)


def _launch(kernel, similarities, second, num_classes, *, seq_tile=None,
            out_dtype=jnp.float32):
    S, B = similarities.shape
    cols = second.shape[1]
    budget, limit = _vmem_budget_and_limit()

    if seq_tile is None:
        row_bytes = (_lane(B) * similarities.dtype.itemsize
                     + _lane(cols) * second.dtype.itemsize
                     + _lane(num_classes) * np.dtype(out_dtype).itemsize)
        ntc = _num_tensorcores()
        min_steps = 2 * ntc if ntc > 1 else 1
        seq_tile = _choose_seq_tile(S, row_bytes, budget=budget,
                                    min_steps=min_steps)
    seq_tile = max(8, _round_up(seq_tile, 8))

    # No wrapper-side padding copies: the ragged last block (if any) is masked by
    # the Pallas pipeline (OOB reads feed row-independent math, OOB writes dropped).
    grid = (_cdiv(S, seq_tile),)

    return pl.pallas_call(
        kernel,
        out_shape=jax.ShapeDtypeStruct((S, num_classes), out_dtype),
        grid_spec=pltpu.PrefetchScalarGridSpec(
            num_scalar_prefetch=0,
            grid=grid,
            in_specs=[
                pl.BlockSpec((seq_tile, B), lambda i: (i, 0)),
                pl.BlockSpec((seq_tile, cols), lambda i: (i, 0)),
            ],
            out_specs=pl.BlockSpec((seq_tile, num_classes), lambda i: (i, 0)),
        ),
        compiler_params=pltpu.CompilerParams(
            dimension_semantics=("parallel",),
            vmem_limit_bytes=limit,
        ),
    )(similarities, second)


def attn_forward(similarities, supports_hots, *, seq_tile=None):
    """Pallas equivalent of Attn.forward(similarities, supports_hots, dim=1)."""
    S, B = similarities.shape
    S2, B2, C = supports_hots.shape
    assert S == S2 and B == B2, "shape mismatch between similarities and supports_hots"

    hots2d = supports_hots.reshape(S, B * C)   # row-major reshape, no HBM copy
    out = _launch(_attn_dense_kernel, similarities, hots2d, C, seq_tile=seq_tile)
    # Match torch's `.squeeze()` exactly: drop every size-1 dim (e.g. S==1 or C==1).
    return jnp.squeeze(out)


def attn_forward_from_labels(similarities, labels, num_classes, *, seq_tile=None):
    """Fast path: int class labels (S, B); one-hot is built in-kernel, shrinking the
    dominant HBM stream by ~num_classes x.  Same output as attn_forward."""
    S, B = similarities.shape
    assert labels.shape == (S, B), "labels must be (sequence_length, batch_size)"
    out = _launch(_attn_labels_kernel, similarities,
                  labels.astype(jnp.int32), num_classes, seq_tile=seq_tile)
    return jnp.squeeze(out)


def _reference(similarities, supports_hots):
    p = jax.nn.softmax(similarities.astype(jnp.float32), axis=1)          # (S, B)
    preds = jnp.einsum("sb,sbc->sc", p, supports_hots.astype(jnp.float32))
    return jnp.squeeze(preds)


if __name__ == "__main__":
    key = jax.random.PRNGKey(0)
    S, B, C = 8, 4, 5  # sequence_length, batch_size, num_classes

    k_sim, k_lbl = jax.random.split(key)
    similarities = jax.random.normal(k_sim, (S, B), dtype=jnp.float32)
    labels = jax.random.randint(k_lbl, (S, B), 0, C)
    supports_hots = jax.nn.one_hot(labels, C, dtype=jnp.float32)          # (S, B, C)

    ref = _reference(similarities, supports_hots)

    # Dense one-hot path (module-faithful interface).
    preds = jax.block_until_ready(attn_forward(similarities, supports_hots))
    assert preds.shape == ref.shape, (preds.shape, ref.shape)
    assert jnp.allclose(preds, ref, atol=1e-5, rtol=1e-5), "mismatch vs reference"

    # Label fast path (in-kernel one-hot).
    preds_l = jax.block_until_ready(attn_forward_from_labels(similarities, labels, C))
    assert preds_l.shape == ref.shape, (preds_l.shape, ref.shape)
    assert jnp.allclose(preds_l, ref, atol=1e-5, rtol=1e-5), "mismatch (labels path)"

    # Ragged S with a multi-step grid + partial last block (no wrapper padding copy).
    S2, B2, C2 = 20, 4, 5
    k1, k2 = jax.random.split(jax.random.PRNGKey(1))
    sims2 = jax.random.normal(k1, (S2, B2), dtype=jnp.float32)
    lbls2 = jax.random.randint(k2, (S2, B2), 0, C2)
    hots2 = jax.nn.one_hot(lbls2, C2, dtype=jnp.float32)
    ref2 = _reference(sims2, hots2)

    preds2 = jax.block_until_ready(attn_forward(sims2, hots2, seq_tile=8))
    assert preds2.shape == ref2.shape, (preds2.shape, ref2.shape)
    assert jnp.allclose(preds2, ref2, atol=1e-5, rtol=1e-5), "mismatch (ragged S)"

    preds2_auto = jax.block_until_ready(attn_forward(sims2, hots2))  # auto tile
    assert jnp.allclose(preds2_auto, ref2, atol=1e-5, rtol=1e-5), "mismatch (auto tile)"

    print("KERNEL_OK")
</pallas_src>

<mosaic_0001>
module attributes {stable_mosaic.version = 11 : i64} {
  func.func @_attn_dense_kernel(%arg0: i32, %arg1: memref<8x4xf32, #tpu.memory_space<vmem>>, %arg2: memref<8x20xf32, #tpu.memory_space<vmem>>, %arg3: memref<8x5xf32, #tpu.memory_space<vmem>>) attributes {dimension_semantics = [#tpu.dimension_semantics<parallel>], iteration_bounds = array<i64: 1>, scalar_prefetch = 0 : i64, scratch_operands = 0 : i64, tpu.core_type = #tpu.core_type<tc>, window_params = [{transform_indices = @transform_0, window_bounds = array<i64: 8, 4>}, {transform_indices = @transform_1, window_bounds = array<i64: 8, 20>}, {transform_indices = @transform_2, window_bounds = array<i64: 8, 5>}]} {
    %c0 = arith.constant 0 : index
    %c0_0 = arith.constant 0 : index
    %0 = vector.load %arg1[%c0, %c0_0] : memref<8x4xf32, #tpu.memory_space<vmem>>, vector<8x4xf32>
    %cst = arith.constant dense<0xFF800000> : vector<8xf32>
    %1 = vector.multi_reduction <maximumf>, %0, %cst [1] : vector<8x4xf32> to vector<8xf32>
    %2 = vector.shape_cast %1 : vector<8xf32> to vector<8x1xf32>
    %3 = vector.broadcast %2 : vector<8x1xf32> to vector<8x4xf32>
    %4 = arith.subf %0, %3 : vector<8x4xf32>
    %5 = math.exp %4 : vector<8x4xf32>
    %cst_1 = arith.constant dense<0.000000e+00> : vector<8xf32>
    %6 = vector.multi_reduction <add>, %5, %cst_1 [1] : vector<8x4xf32> to vector<8xf32>
    %7 = vector.shape_cast %6 : vector<8xf32> to vector<8x1xf32>
    %8 = vector.broadcast %7 : vector<8x1xf32> to vector<8x4xf32>
    %9 = arith.divf %5, %8 : vector<8x4xf32>
    %cst_2 = arith.constant 0.000000e+00 : f32
    %10 = vector.broadcast %cst_2 : f32 to vector<8x5xf32>
    %c0_3 = arith.constant 0 : index
    %c0_4 = arith.constant 0 : index
    %11 = vector.load %arg2[%c0_3, %c0_4] : memref<8x20xf32, #tpu.memory_space<vmem>>, vector<8x5xf32>
    %12 = vector.extract_strided_slice %9 {offsets = [0, 0], sizes = [8, 1], strides = [1, 1]} : vector<8x4xf32> to vector<8x1xf32>
    %13 = vector.broadcast %12 : vector<8x1xf32> to vector<8x5xf32>
    %14 = arith.mulf %13, %11 : vector<8x5xf32>
    %15 = arith.addf %10, %14 : vector<8x5xf32>
    %c0_5 = arith.constant 0 : index
    %c5 = arith.constant 5 : index
    %16 = vector.load %arg2[%c0_5, %c5] : memref<8x20xf32, #tpu.memory_space<vmem>>, vector<8x5xf32>
    %17 = vector.extract_strided_slice %9 {offsets = [0, 1], sizes = [8, 1], strides = [1, 1]} : vector<8x4xf32> to vector<8x1xf32>
    %18 = vector.broadcast %17 : vector<8x1xf32> to vector<8x5xf32>
    %19 = arith.mulf %18, %16 : vector<8x5xf32>
    %20 = arith.addf %15, %19 : vector<8x5xf32>
    %c0_6 = arith.constant 0 : index
    %c10 = arith.constant 10 : index
    %21 = vector.load %arg2[%c0_6, %c10] : memref<8x20xf32, #tpu.memory_space<vmem>>, vector<8x5xf32>
    %22 = vector.extract_strided_slice %9 {offsets = [0, 2], sizes = [8, 1], strides = [1, 1]} : vector<8x4xf32> to vector<8x1xf32>
    %23 = vector.broadcast %22 : vector<8x1xf32> to vector<8x5xf32>
    %24 = arith.mulf %23, %21 : vector<8x5xf32>
    %25 = arith.addf %20, %24 : vector<8x5xf32>
    %c0_7 = arith.constant 0 : index
    %c15 = arith.constant 15 : index
    %26 = vector.load %arg2[%c0_7, %c15] : memref<8x20xf32, #tpu.memory_space<vmem>>, vector<8x5xf32>
    %27 = vector.extract_strided_slice %9 {offsets = [0, 3], sizes = [8, 1], strides = [1, 1]} : vector<8x4xf32> to vector<8x1xf32>
    %28 = vector.broadcast %27 : vector<8x1xf32> to vector<8x5xf32>
    %29 = arith.mulf %28, %26 : vector<8x5xf32>
    %30 = arith.addf %25, %29 : vector<8x5xf32>
    %c0_8 = arith.constant 0 : index
    %c0_9 = arith.constant 0 : index
    %31 = vector.load %arg3[%c0_8, %c0_9] : memref<8x5xf32, #tpu.memory_space<vmem>>, vector<8x5xf32>
    tpu.vector_store %arg3[%c0_8, %c0_9], %30 {strides = array<i32>} : memref<8x5xf32, #tpu.memory_space<vmem>>, vector<8x5xf32>,
    return
  }
  func.func @transform_0(%arg0: i32) -> (i32, i32) {
    %c0_i32 = arith.constant 0 : i32
    %c0_i32_0 = arith.constant 0 : i32
    return %arg0, %c0_i32 : i32, i32
  }
  func.func @transform_1(%arg0: i32) -> (i32, i32) {
    %c0_i32 = arith.constant 0 : i32
    %c0_i32_0 = arith.constant 0 : i32
    return %arg0, %c0_i32 : i32, i32
  }
  func.func @transform_2(%arg0: i32) -> (i32, i32) {
    %c0_i32 = arith.constant 0 : i32
    %c0_i32_0 = arith.constant 0 : i32
    return %arg0, %c0_i32 : i32, i32
  }
}

</mosaic_0001>

<bundles_post_ra>
// kernel: tpu_custom_call.1
= control target key start
LH: loop header
LB: loop body
LE: loop exit
PB: predicated region body
PF: predicated region fallthrough
CT: control target
= control target key end

     0   :  { %vm13_vm0 = vcmask 31744   ;;  %s149_s0 = inlined_call_operand.vmem [shape: f32[8,4], index: 0, kind: input, shape index: {}]   ;;  %s150_s1 = inlined_call_operand.vmem [shape: f32[8,20], index: 1, kind: input, shape index: {}]   ;;  %s151_s2 = inlined_call_operand.hbm [shape: f32[8,5], index: 2, kind: output, shape index: {}]  }
   0x1   :  { %v12_v0 = vld [vmem:[%s149_s0] sm:$0xff] }
   0x2   :  { %7 = vsyncpa [#allocation3], 0  ;;  %v14_v1 = vsel %vm13_vm0, %v12_v0, -inf  ;;  %v117_v7 = vmov 3   ;;  %v118_v8 = vmov 1   ;;  %v119_v12 = vmov 2  }
   0x3   :  { %15 = vmax.xlane.f32.xlu0 %v14_v1  ;;  %87 = vset.pattern.permute.xlu1 %v118_v8  ;;  %v120_v13 = vmov 0   ;;  %v25_v14 = vld [vmem:[%s150_s1] sm:$0xff]  ;;  %s121_s12 = smov 123   ;;  %s122_s13 = smov 118   ;;  %vm63_vm1 = vcmask 39936  }
   0x4   :  { %89 = vset.pattern.permute.xlu0 %v117_v7  ;;  %s123_s14 = smov 113   ;;  %s124_s15 = smov [#allocation2]  }
   0x5   :  { %s71_s16 = sshll.u32 %s124_s15, 4  ;;  %s72_s16 = int_to_ptr.vmem [resolvable:$true] %s71_s16 }
   0x6   :  { %s95_s1 = scalar_lea.vmem %s72_s16, 128  ;;  %p100_p1 = scmp.lt.s32.totalorder %s72_s16, %s72_s16 }
   0x7   :  { %p96_p0 = scmp.ne.s32.totalorder %s72_s16, %s95_s1  ;;  %p101_p2 = scmp.lt.s32.totalorder %s95_s1, %s95_s1 }
   0x9   :  { %p102_p3 = por %p101_p2, %p100_p1 }
   0xb   :  { %p103_p4 = pnand %p102_p3, %p96_p0 }
  0x8c   :  { %v16_v2 = vpop.xlane.xlu0 %15 }
  0x8d   :  { %v17_v3 = vsub.f32 %v12_v0, %v16_v2 }
  0x8f   :  { %v18_v4 = vmul.f32 1.442695, %v17_v3 }
  0x91   :  { %91 = vpow2.f32 %v18_v4 }
  0x9e   :  { %v92_v5 = vpop.eup %91 }
  0x9f   :  { %v20_v6 = vsel %vm13_vm0, %v92_v5, 0.0 }
  0xa0   :  { %21 = vadd.xlane.f32.xlu0 %v20_v6 }
 0x129   :  { %v22_v9 = vpop.xlane.xlu0 %21 }
 0x12a   :  { %93 = vrcp.f32 %v22_v9 }
 0x137   :  { %v94_v10 = vpop.eup %93 }
 0x138   :  { %v24_v11 = vmul.f32 %v94_v10, %v92_v5 }
 0x13a   :  { %54 = vperm.xlu0 %89, %v24_v11   ;;  %34 = vperm.xlu1 %87, %v24_v11  }
 0x13e   :  { %88 = vset.pattern.permute.xlu1 %v119_v12 }
 0x13f   :  { %44 = vperm.xlu1 %88, %v24_v11  }
 0x143   :  { %90 = vset.pattern.permute.xlu1 %v120_v13 }
 0x144   :  { %28 = vperm.xlu1 %90, %v24_v11  }
 0x1b5   :  { %v35_v15 = vpop.permute.xlu1 %34  ;;  %v55_v19 = vpop.permute.xlu0 %54 }
 0x1b6   :  { %v37_v16 = vmul.f32 %v35_v15, %v25_v14  ;;  %v57_v20 = vmul.f32 %v55_v19, %v25_v14 }
 0x1b8   :  { %39 = vrot.lane.b32.xlu1 %v37_v16, %s121_s12 }
 0x1ba   :  { %v45_v17 = vpop.permute.xlu1 %44 }
 0x1bb   :  { %v47_v18 = vmul.f32 %v45_v17, %v25_v14 }
 0x1bd   :  { %49 = vrot.lane.b32.xlu1 %v47_v18, %s122_s13 }
 0x1bf   :  { %v29_v21 = vpop.permute.xlu1 %28 }
 0x1c0   :  { %v31_v23 = vmul.f32 %v29_v21, %v25_v14 }
 0x1c1   :  { %59 = vrot.lane.b32.xlu1 %v57_v20, %s123_s14 }
 0x22a   :  { %v40_v22 = vpop.permute.xlu1 %39 }
 0x22b   :  { %v42_v25 = vadd.f32 %v40_v22, %v31_v23 }
 0x22f   :  { %v50_v24 = vpop.permute.xlu1 %49 }
 0x230   :  { %v52_v26 = vadd.f32 %v50_v24, %v42_v25 }
 0x233   :  { %v60_v27 = vpop.permute.xlu1 %59 }
 0x234   :  { %v62_v28 = vadd.f32 %v60_v27, %v52_v26 }
 0x236   :  { %64 = vst.msk [vmem:[#allocation2] sm:$0xff] %vm63_vm1, %v62_v28 }
 0x237   :  { %106 = shalt.err (!%p103_p4)
}
 0x238   :  { %74 = dma.vmem_to_hbm [thread:$0]  %s72_s16, 128, %s151_s2, [#allocation3]  }
 0x239   :  { %115 = dma.done.wait [#allocation3], 128  }
 0x23a   :  { %116 = vsyncadd [#allocation3], 4294967168 }
 0x23b   :  { %78 = vsyncpa [#allocation3], 1 }

</bundles_post_ra>
